<compile_context>
chip_gen: v5e
topology: v5e:2x2
jax: 0.10.0
libtpu: 0.0.40
codegen_flags: <defaults>
</compile_context>

<pallas_src>
import functools

import jax
import jax.numpy as jnp
from jax.experimental import pallas as pl
from jax.experimental.pallas import tpu as pltpu

MASK_TOKEN_ID = 50264


def _soft_embedding_kernel(tok_ref, sin_ref, wte_hbm, learned_ref, out_ref,
                           gather_buf, sems, *, tq, n_dma, n_soft):
    b = pl.program_id(0)
    t = pl.program_id(1)
    s_in = sin_ref[0]                      # S - n_tok (traced scalar, SMEM)
    base = t * tq                          # first global row of this tile
    # Rows [0, n_gather) of this tile come from the vocab-embedding gather;
    # rows [n_gather, tq) are soft-prompt rows.
    n_gather = jnp.clip(s_in - base, 0, tq)

    def _issue(i):
        tok = tok_ref[b, base + i]
        pltpu.make_async_copy(
            wte_hbm.at[pl.ds(tok, 1), :],
            gather_buf.at[pl.ds(i, 1), :],
            sems.at[i % n_dma],
        ).start()

    def _wait(i):
        # Same shape/dtype as the issued copy -> same byte count on the sem.
        pltpu.make_async_copy(
            wte_hbm.at[pl.ds(0, 1), :],
            gather_buf.at[pl.ds(i, 1), :],
            sems.at[i % n_dma],
        ).wait()

    n_inflight = jnp.minimum(n_gather, n_dma)

    # Prime: put up to n_dma row gathers in flight.
    def _prime_body(i, c):
        _issue(i)
        return c
    jax.lax.fori_loop(0, n_inflight, _prime_body, 0)

    # Steady state: wait on a slot, immediately reuse it for the next row.
    def _steady_body(i, c):
        _wait(i - n_dma)
        _issue(i)
        return c
    jax.lax.fori_loop(n_dma, n_gather, _steady_body, 0)

    # Drain the remaining in-flight copies.
    def _drain_body(i, c):
        _wait(i)
        return c
    jax.lax.fori_loop(n_gather - n_inflight, n_gather, _drain_body, 0)

    # Exactly one dense (tq, D) store per grid step.
    @pl.when(n_gather >= tq)
    def _():                               # tile fully inside the gather region
        out_ref[...] = gather_buf[...]

    @pl.when(n_gather < tq)
    def _():                               # tile contains soft-prompt rows
        rows = base + jax.lax.broadcasted_iota(jnp.int32, (tq, 1), 0)
        lidx = rows - s_in                 # >= 0 only on soft-prompt rows
        tile = gather_buf[...]
        for j in range(n_soft):            # n_soft is small (soft-prompt length)
            tile = jnp.where(lidx == j, learned_ref[j, :][None, :], tile)
        out_ref[...] = tile


def _pick_tile_rows(seq_len, max_rows):
    # Largest sublane-aligned (multiple of 8) tile <= max_rows that evenly
    # divides seq_len; otherwise fall back to the full sequence extent.
    best = None
    t = 8
    while t <= min(max_rows, seq_len):
        if seq_len % t == 0:
            best = t
        t += 8
    return best if best is not None else seq_len


def soft_embedding_forward(tokens, wte_weight, learned_embedding,
                           *, tile_rows=256, n_dma=8):
    # tokens [B, S] int; wte_weight [V, D]; learned_embedding [N_soft, D];
    # output [B, S, D] in wte_weight.dtype (same axis order as PyTorch).
    B, S = tokens.shape
    V, D = wte_weight.shape
    n_soft = learned_embedding.shape[0]
    out_dtype = wte_weight.dtype

    tokens = tokens.astype(jnp.int32)
    # Mask-token count computed on device: no host sync, no recompile across
    # different mask counts.  (Like the PyTorch module, mask tokens are
    # assumed contiguous at the tail and identical across batch rows.)
    n_tok = jnp.sum((tokens[0] == MASK_TOKEN_ID).astype(jnp.int32))
    s_in = (jnp.int32(S) - n_tok).reshape((1,))

    tq = _pick_tile_rows(S, tile_rows)
    grid = (B, S // tq)

    # VMEM budget: 2x double-buffered (tq, D) output + (tq, D) gather scratch
    # + resident learned embedding + slack; capped below the 64 MiB v7x limit.
    itemsize = jnp.dtype(out_dtype).itemsize
    tile_bytes = tq * D * itemsize
    vmem_bytes = 3 * tile_bytes + 2 * n_soft * D * itemsize + (2 << 20)
    vmem_limit = int(min(max(vmem_bytes, 16 << 20), 64 << 20))

    grid_spec = pltpu.PrefetchScalarGridSpec(
        num_scalar_prefetch=2,                         # tokens + s_in in SMEM
        grid=grid,
        in_specs=[
            pl.BlockSpec(memory_space=pl.ANY),                        # wte in HBM
            pl.BlockSpec((n_soft, D), lambda b, t, tok, sin: (0, 0)), # learned, VMEM
        ],
        out_specs=pl.BlockSpec((None, tq, D), lambda b, t, tok, sin: (b, t, 0)),
        scratch_shapes=[
            pltpu.VMEM((tq, D), out_dtype),            # gathered rows
            pltpu.SemaphoreType.DMA((n_dma,)),         # DMA ring
        ],
    )

    kernel = functools.partial(
        _soft_embedding_kernel, tq=tq, n_dma=n_dma, n_soft=n_soft)

    return pl.pallas_call(
        kernel,
        out_shape=jax.ShapeDtypeStruct((B, S, D), out_dtype),
        grid_spec=grid_spec,
        compiler_params=pltpu.CompilerParams(
            dimension_semantics=("parallel", "parallel"),
            vmem_limit_bytes=vmem_limit),
    )(tokens, s_in, wte_weight, learned_embedding)


if __name__ == "__main__":
    B, S = 2, 8          # batch, sequence length
    V, D = 128, 128      # toy vocab size, hidden size
    N_SOFT_PARAM = 10    # SoftEmbedding(n_tokens=10)
    n_mask = 3           # number of 50264 mask tokens appended to each sequence

    key = jax.random.PRNGKey(0)
    k_w, k_t = jax.random.split(key)

    # nn.Embedding weight (deterministic synthetic init).
    wte_weight = jax.random.normal(k_w, (V, D), dtype=jnp.float32)
    # initialize_from_vocab=True  ->  learned_embedding = wte.weight[:n_tokens]
    learned_embedding = wte_weight[:N_SOFT_PARAM]

    # Tokens: random vocab ids with the mask token appended at the tail.
    tokens = jax.random.randint(k_t, (B, S), 0, V, dtype=jnp.int32)
    tokens = tokens.at[:, S - n_mask:].set(MASK_TOKEN_ID)

    out = soft_embedding_forward(tokens, wte_weight, learned_embedding)
    out = jax.block_until_ready(out)

    # Plain-JAX reference of the PyTorch forward.
    ref = jnp.concatenate(
        [
            wte_weight[tokens[:, : S - n_mask]],
            jnp.broadcast_to(learned_embedding[:n_mask], (B, n_mask, D)),
        ],
        axis=1,
    )
    assert out.shape == (B, S, D)
    assert out.dtype == jnp.float32
    assert jnp.allclose(out, ref), "Pallas output mismatch vs reference"
    print("KERNEL_OK")
</pallas_src>

<mosaic_0001>
module attributes {stable_mosaic.version = 11 : i64} {
  func.func @_soft_embedding_kernel(%arg0: i32, %arg1: i32, %arg2: memref<2x8xi32, #tpu.memory_space<smem>>, %arg3: memref<1xi32, #tpu.memory_space<smem>>, %arg4: memref<128x128xf32, #tpu.memory_space<any>>, %arg5: memref<10x128xf32, #tpu.memory_space<vmem>>, %arg6: memref<1x8x128xf32, #tpu.memory_space<vmem>>, %arg7: memref<8x128xf32, #tpu.memory_space<vmem>>, %arg8: memref<8x!tpu.dma_semaphore, #tpu.memory_space<semaphore_mem>>) attributes {dimension_semantics = [#tpu.dimension_semantics<parallel>, #tpu.dimension_semantics<parallel>], iteration_bounds = array<i64: 2, 1>, scalar_prefetch = 2 : i64, scratch_operands = 2 : i64, tpu.core_type = #tpu.core_type<tc>, window_params = [{}, {pipeline_mode = #tpu.pipeline_mode<synchronous>, transform_indices = @transform_1, window_bounds = array<i64: 10, 128>}, {transform_indices = @transform_2, window_bounds = array<i64: 1, 8, 128>}]} {
    %c0 = arith.constant 0 : index
    %0 = memref.load %arg3[%c0] : memref<1xi32, #tpu.memory_space<smem>>
    %c8_i32 = arith.constant 8 : i32
    %1 = arith.muli %arg1, %c8_i32 : i32
    %2 = arith.subi %0, %1 : i32
    %c0_i32 = arith.constant 0 : i32
    %c8_i32_0 = arith.constant 8 : i32
    %3 = arith.maxsi %c0_i32, %2 : i32
    %4 = arith.minsi %c8_i32_0, %3 : i32
    %c8_i32_1 = arith.constant 8 : i32
    %5 = arith.minsi %4, %c8_i32_1 : i32
    %c0_i32_2 = arith.constant 0 : i32
    %c0_i32_3 = arith.constant 0 : i32
    %6 = arith.subi %5, %c0_i32_3 : i32
    %7 = arith.addi %c0_i32_3, %6 : i32
    %c1_i32 = arith.constant 1 : i32
    scf.for %arg9 = %c0_i32_3 to %7 step %c1_i32  : i32 {
      %19 = arith.addi %1, %arg9 : i32
      %20 = arith.index_cast %arg0 : i32 to index
      %21 = arith.index_cast %19 : i32 to index
      %22 = memref.load %arg2[%20, %21] : memref<2x8xi32, #tpu.memory_space<smem>>
      %c8_i32_13 = arith.constant 8 : i32
      %c0_i32_14 = arith.constant 0 : i32
      %23 = arith.cmpi eq, %c8_i32_13, %c0_i32_14 : i32
      %c1_i32_15 = arith.constant 1 : i32
      %24 = arith.select %23, %c1_i32_15, %c8_i32_13 : i32
      %25 = arith.remsi %arg9, %24 : i32
      %c0_i32_16 = arith.constant 0 : i32
      %26 = arith.cmpi ne, %25, %c0_i32_16 : i32
      %c0_i32_17 = arith.constant 0 : i32
      %27 = arith.cmpi slt, %25, %c0_i32_17 : i32
      %c0_i32_18 = arith.constant 0 : i32
      %28 = arith.cmpi slt, %24, %c0_i32_18 : i32
      %29 = arith.xori %27, %28 : i1
      %30 = arith.andi %29, %26 : i1
      %31 = arith.addi %25, %24 : i32
      %32 = arith.select %30, %31, %25 : i32
      %c0_i32_19 = arith.constant 0 : i32
      %33 = tpu.memref_slice %arg4[%22, %c0_i32_19] : memref<128x128xf32, #tpu.memory_space<any>> -> memref<1x128xf32, #tpu.memory_space<any>>
      %c0_i32_20 = arith.constant 0 : i32
      %34 = tpu.memref_slice %arg7[%arg9, %c0_i32_20] : memref<8x128xf32, #tpu.memory_space<vmem>> -> memref<1x128xf32, #tpu.memory_space<vmem>>
      %35 = tpu.memref_slice %arg8[%32] : memref<8x!tpu.dma_semaphore, #tpu.memory_space<semaphore_mem>> -> memref<1x!tpu.dma_semaphore, #tpu.memory_space<semaphore_mem>>
      %36 = tpu.memref_squeeze %35 : memref<1x!tpu.dma_semaphore, #tpu.memory_space<semaphore_mem>> -> memref<!tpu.dma_semaphore, #tpu.memory_space<semaphore_mem>>
      tpu.enqueue_dma source(%33 : memref<1x128xf32, #tpu.memory_space<any>>) target(%34 : memref<1x128xf32, #tpu.memory_space<vmem>>) target_semaphore(%36 : memref<!tpu.dma_semaphore, #tpu.memory_space<semaphore_mem>>)
    }
    %c0_i32_4 = arith.constant 0 : i32
    %c8_i32_5 = arith.constant 8 : i32
    %8 = arith.subi %4, %c8_i32_5 : i32
    %9 = arith.addi %c8_i32_5, %8 : i32
    %c1_i32_6 = arith.constant 1 : i32
    scf.for %arg9 = %c8_i32_5 to %9 step %c1_i32_6  : i32 {
      %c8_i32_13 = arith.constant 8 : i32
      %19 = arith.subi %arg9, %c8_i32_13 : i32
      %c8_i32_14 = arith.constant 8 : i32
      %c0_i32_15 = arith.constant 0 : i32
      %20 = arith.cmpi eq, %c8_i32_14, %c0_i32_15 : i32
      %c1_i32_16 = arith.constant 1 : i32
      %21 = arith.select %20, %c1_i32_16, %c8_i32_14 : i32
      %22 = arith.remsi %19, %21 : i32
      %c0_i32_17 = arith.constant 0 : i32
      %23 = arith.cmpi ne, %22, %c0_i32_17 : i32
      %c0_i32_18 = arith.constant 0 : i32
      %24 = arith.cmpi slt, %22, %c0_i32_18 : i32
      %c0_i32_19 = arith.constant 0 : i32
      %25 = arith.cmpi slt, %21, %c0_i32_19 : i32
      %26 = arith.xori %24, %25 : i1
      %27 = arith.andi %26, %23 : i1
      %28 = arith.addi %22, %21 : i32
      %29 = arith.select %27, %28, %22 : i32
      %c0_i32_20 = arith.constant 0 : i32
      %c0_i32_21 = arith.constant 0 : i32
      %30 = tpu.memref_slice %arg4[%c0_i32_20, %c0_i32_21] : memref<128x128xf32, #tpu.memory_space<any>> -> memref<1x128xf32, #tpu.memory_space<any>>
      %c0_i32_22 = arith.constant 0 : i32
      %31 = tpu.memref_slice %arg7[%19, %c0_i32_22] : memref<8x128xf32, #tpu.memory_space<vmem>> -> memref<1x128xf32, #tpu.memory_space<vmem>>
      %32 = tpu.memref_slice %arg8[%29] : memref<8x!tpu.dma_semaphore, #tpu.memory_space<semaphore_mem>> -> memref<1x!tpu.dma_semaphore, #tpu.memory_space<semaphore_mem>>
      %33 = tpu.memref_squeeze %32 : memref<1x!tpu.dma_semaphore, #tpu.memory_space<semaphore_mem>> -> memref<!tpu.dma_semaphore, #tpu.memory_space<semaphore_mem>>
      tpu.wait_dma2 semaphore(%33 : memref<!tpu.dma_semaphore, #tpu.memory_space<semaphore_mem>>) src(%30 : memref<1x128xf32, #tpu.memory_space<any>>) dst(%31 : memref<1x128xf32, #tpu.memory_space<vmem>>)
      %34 = arith.addi %1, %arg9 : i32
      %35 = arith.index_cast %arg0 : i32 to index
      %36 = arith.index_cast %34 : i32 to index
      %37 = memref.load %arg2[%35, %36] : memref<2x8xi32, #tpu.memory_space<smem>>
      %c8_i32_23 = arith.constant 8 : i32
      %c0_i32_24 = arith.constant 0 : i32
      %38 = arith.cmpi eq, %c8_i32_23, %c0_i32_24 : i32
      %c1_i32_25 = arith.constant 1 : i32
      %39 = arith.select %38, %c1_i32_25, %c8_i32_23 : i32
      %40 = arith.remsi %arg9, %39 : i32
      %c0_i32_26 = arith.constant 0 : i32
      %41 = arith.cmpi ne, %40, %c0_i32_26 : i32
      %c0_i32_27 = arith.constant 0 : i32
      %42 = arith.cmpi slt, %40, %c0_i32_27 : i32
      %c0_i32_28 = arith.constant 0 : i32
      %43 = arith.cmpi slt, %39, %c0_i32_28 : i32
      %44 = arith.xori %42, %43 : i1
      %45 = arith.andi %44, %41 : i1
      %46 = arith.addi %40, %39 : i32
      %47 = arith.select %45, %46, %40 : i32
      %c0_i32_29 = arith.constant 0 : i32
      %48 = tpu.memref_slice %arg4[%37, %c0_i32_29] : memref<128x128xf32, #tpu.memory_space<any>> -> memref<1x128xf32, #tpu.memory_space<any>>
      %c0_i32_30 = arith.constant 0 : i32
      %49 = tpu.memref_slice %arg7[%arg9, %c0_i32_30] : memref<8x128xf32, #tpu.memory_space<vmem>> -> memref<1x128xf32, #tpu.memory_space<vmem>>
      %50 = tpu.memref_slice %arg8[%47] : memref<8x!tpu.dma_semaphore, #tpu.memory_space<semaphore_mem>> -> memref<1x!tpu.dma_semaphore, #tpu.memory_space<semaphore_mem>>
      %51 = tpu.memref_squeeze %50 : memref<1x!tpu.dma_semaphore, #tpu.memory_space<semaphore_mem>> -> memref<!tpu.dma_semaphore, #tpu.memory_space<semaphore_mem>>
      tpu.enqueue_dma source(%48 : memref<1x128xf32, #tpu.memory_space<any>>) target(%49 : memref<1x128xf32, #tpu.memory_space<vmem>>) target_semaphore(%51 : memref<!tpu.dma_semaphore, #tpu.memory_space<semaphore_mem>>)
    }
    %10 = arith.subi %4, %5 : i32
    %c0_i32_7 = arith.constant 0 : i32
    %11 = arith.subi %4, %10 : i32
    %12 = arith.addi %10, %11 : i32
    %c1_i32_8 = arith.constant 1 : i32
    scf.for %arg9 = %10 to %12 step %c1_i32_8  : i32 {
      %c8_i32_13 = arith.constant 8 : i32
      %c0_i32_14 = arith.constant 0 : i32
      %19 = arith.cmpi eq, %c8_i32_13, %c0_i32_14 : i32
      %c1_i32_15 = arith.constant 1 : i32
      %20 = arith.select %19, %c1_i32_15, %c8_i32_13 : i32
      %21 = arith.remsi %arg9, %20 : i32
      %c0_i32_16 = arith.constant 0 : i32
      %22 = arith.cmpi ne, %21, %c0_i32_16 : i32
      %c0_i32_17 = arith.constant 0 : i32
      %23 = arith.cmpi slt, %21, %c0_i32_17 : i32
      %c0_i32_18 = arith.constant 0 : i32
      %24 = arith.cmpi slt, %20, %c0_i32_18 : i32
      %25 = arith.xori %23, %24 : i1
      %26 = arith.andi %25, %22 : i1
      %27 = arith.addi %21, %20 : i32
      %28 = arith.select %26, %27, %21 : i32
      %c0_i32_19 = arith.constant 0 : i32
      %c0_i32_20 = arith.constant 0 : i32
      %29 = tpu.memref_slice %arg4[%c0_i32_19, %c0_i32_20] : memref<128x128xf32, #tpu.memory_space<any>> -> memref<1x128xf32, #tpu.memory_space<any>>
      %c0_i32_21 = arith.constant 0 : i32
      %30 = tpu.memref_slice %arg7[%arg9, %c0_i32_21] : memref<8x128xf32, #tpu.memory_space<vmem>> -> memref<1x128xf32, #tpu.memory_space<vmem>>
      %31 = tpu.memref_slice %arg8[%28] : memref<8x!tpu.dma_semaphore, #tpu.memory_space<semaphore_mem>> -> memref<1x!tpu.dma_semaphore, #tpu.memory_space<semaphore_mem>>
      %32 = tpu.memref_squeeze %31 : memref<1x!tpu.dma_semaphore, #tpu.memory_space<semaphore_mem>> -> memref<!tpu.dma_semaphore, #tpu.memory_space<semaphore_mem>>
      tpu.wait_dma2 semaphore(%32 : memref<!tpu.dma_semaphore, #tpu.memory_space<semaphore_mem>>) src(%29 : memref<1x128xf32, #tpu.memory_space<any>>) dst(%30 : memref<1x128xf32, #tpu.memory_space<vmem>>)
    }
    %c8_i32_9 = arith.constant 8 : i32
    %13 = arith.cmpi sge, %4, %c8_i32_9 : i32
    %14 = arith.extui %13 : i1 to i32
    %c0_i32_10 = arith.constant 0 : i32
    %15 = arith.cmpi ne, %14, %c0_i32_10 : i32
    scf.if %15 {
      %c0_13 = arith.constant 0 : index
      %c0_14 = arith.constant 0 : index
      %19 = vector.load %arg7[%c0_13, %c0_14] : memref<8x128xf32, #tpu.memory_space<vmem>>, vector<8x128xf32>
      %c0_15 = arith.constant 0 : index
      %c0_16 = arith.constant 0 : index
      %c0_17 = arith.constant 0 : index
      %20 = vector.load %arg6[%c0_15, %c0_16, %c0_17] : memref<1x8x128xf32, #tpu.memory_space<vmem>>, vector<1x8x128xf32>
      %21 = vector.shape_cast %20 : vector<1x8x128xf32> to vector<8x128xf32>
      %22 = vector.shape_cast %19 : vector<8x128xf32> to vector<1x8x128xf32>
      tpu.vector_store %arg6[%c0_15, %c0_16, %c0_17], %22 {strides = array<i32>} : memref<1x8x128xf32, #tpu.memory_space<vmem>>, vector<1x8x128xf32>,
    } else {
    }
    %c8_i32_11 = arith.constant 8 : i32
    %16 = arith.cmpi slt, %4, %c8_i32_11 : i32
    %17 = arith.extui %16 : i1 to i32
    %c0_i32_12 = arith.constant 0 : i32
    %18 = arith.cmpi ne, %17, %c0_i32_12 : i32
    scf.if %18 {
      %19 = tpu.iota {dimensions = array<i32: 0>} : vector<8x1xi32>
      %20 = vector.broadcast %1 : i32 to vector<8x1xi32>
      %21 = arith.addi %20, %19 : vector<8x1xi32>
      %22 = vector.broadcast %0 : i32 to vector<8x1xi32>
      %23 = arith.subi %21, %22 : vector<8x1xi32>
      %c0_13 = arith.constant 0 : index
      %c0_14 = arith.constant 0 : index
      %24 = vector.load %arg7[%c0_13, %c0_14] : memref<8x128xf32, #tpu.memory_space<vmem>>, vector<8x128xf32>
      %c0_i32_15 = arith.constant 0 : i32
      %25 = vector.broadcast %c0_i32_15 : i32 to vector<8x1xi32>
      %26 = arith.cmpi eq, %23, %25 : vector<8x1xi32>
      %c0_16 = arith.constant 0 : index
      %c0_17 = arith.constant 0 : index
      %27 = vector.load %arg5[%c0_16, %c0_17] : memref<10x128xf32, #tpu.memory_space<vmem>>, vector<1x128xf32>
      %28 = vector.shape_cast %27 : vector<1x128xf32> to vector<128xf32>
      %29 = vector.shape_cast %28 : vector<128xf32> to vector<1x128xf32>
      %30 = vector.shape_cast %26 : vector<8x1xi1> to vector<8x1xi1>
      %31 = vector.broadcast %30 : vector<8x1xi1> to vector<8x128xi1>
      %32 = vector.shape_cast %29 : vector<1x128xf32> to vector<1x128xf32>
      %33 = vector.broadcast %32 : vector<1x128xf32> to vector<8x128xf32>
      %34 = arith.select %31, %33, %24 : vector<8x128xi1>, vector<8x128xf32>
      %c1_i32_18 = arith.constant 1 : i32
      %35 = vector.broadcast %c1_i32_18 : i32 to vector<8x1xi32>
      %36 = arith.cmpi eq, %23, %35 : vector<8x1xi32>
      %c1 = arith.constant 1 : index
      %c0_19 = arith.constant 0 : index
      %37 = vector.load %arg5[%c1, %c0_19] : memref<10x128xf32, #tpu.memory_space<vmem>>, vector<1x128xf32>
      %38 = vector.shape_cast %37 : vector<1x128xf32> to vector<128xf32>
      %39 = vector.shape_cast %38 : vector<128xf32> to vector<1x128xf32>
      %40 = vector.shape_cast %36 : vector<8x1xi1> to vector<8x1xi1>
      %41 = vector.broadcast %40 : vector<8x1xi1> to vector<8x128xi1>
      %42 = vector.shape_cast %39 : vector<1x128xf32> to vector<1x128xf32>
      %43 = vector.broadcast %42 : vector<1x128xf32> to vector<8x128xf32>
      %44 = arith.select %41, %43, %34 : vector<8x128xi1>, vector<8x128xf32>
      %c2_i32 = arith.constant 2 : i32
      %45 = vector.broadcast %c2_i32 : i32 to vector<8x1xi32>
      %46 = arith.cmpi eq, %23, %45 : vector<8x1xi32>
      %c2 = arith.constant 2 : index
      %c0_20 = arith.constant 0 : index
      %47 = vector.load %arg5[%c2, %c0_20] : memref<10x128xf32, #tpu.memory_space<vmem>>, vector<1x128xf32>
      %48 = vector.shape_cast %47 : vector<1x128xf32> to vector<128xf32>
      %49 = vector.shape_cast %48 : vector<128xf32> to vector<1x128xf32>
      %50 = vector.shape_cast %46 : vector<8x1xi1> to vector<8x1xi1>
      %51 = vector.broadcast %50 : vector<8x1xi1> to vector<8x128xi1>
      %52 = vector.shape_cast %49 : vector<1x128xf32> to vector<1x128xf32>
      %53 = vector.broadcast %52 : vector<1x128xf32> to vector<8x128xf32>
      %54 = arith.select %51, %53, %44 : vector<8x128xi1>, vector<8x128xf32>
      %c3_i32 = arith.constant 3 : i32
      %55 = vector.broadcast %c3_i32 : i32 to vector<8x1xi32>
      %56 = arith.cmpi eq, %23, %55 : vector<8x1xi32>
      %c3 = arith.constant 3 : index
      %c0_21 = arith.constant 0 : index
      %57 = vector.load %arg5[%c3, %c0_21] : memref<10x128xf32, #tpu.memory_space<vmem>>, vector<1x128xf32>
      %58 = vector.shape_cast %57 : vector<1x128xf32> to vector<128xf32>
      %59 = vector.shape_cast %58 : vector<128xf32> to vector<1x128xf32>
      %60 = vector.shape_cast %56 : vector<8x1xi1> to vector<8x1xi1>
      %61 = vector.broadcast %60 : vector<8x1xi1> to vector<8x128xi1>
      %62 = vector.shape_cast %59 : vector<1x128xf32> to vector<1x128xf32>
      %63 = vector.broadcast %62 : vector<1x128xf32> to vector<8x128xf32>
      %64 = arith.select %61, %63, %54 : vector<8x128xi1>, vector<8x128xf32>
      %c4_i32 = arith.constant 4 : i32
      %65 = vector.broadcast %c4_i32 : i32 to vector<8x1xi32>
      %66 = arith.cmpi eq, %23, %65 : vector<8x1xi32>
      %c4 = arith.constant 4 : index
      %c0_22 = arith.constant 0 : index
      %67 = vector.load %arg5[%c4, %c0_22] : memref<10x128xf32, #tpu.memory_space<vmem>>, vector<1x128xf32>
      %68 = vector.shape_cast %67 : vector<1x128xf32> to vector<128xf32>
      %69 = vector.shape_cast %68 : vector<128xf32> to vector<1x128xf32>
      %70 = vector.shape_cast %66 : vector<8x1xi1> to vector<8x1xi1>
      %71 = vector.broadcast %70 : vector<8x1xi1> to vector<8x128xi1>
      %72 = vector.shape_cast %69 : vector<1x128xf32> to vector<1x128xf32>
      %73 = vector.broadcast %72 : vector<1x128xf32> to vector<8x128xf32>
      %74 = arith.select %71, %73, %64 : vector<8x128xi1>, vector<8x128xf32>
      %c5_i32 = arith.constant 5 : i32
      %75 = vector.broadcast %c5_i32 : i32 to vector<8x1xi32>
      %76 = arith.cmpi eq, %23, %75 : vector<8x1xi32>
      %c5 = arith.constant 5 : index
      %c0_23 = arith.constant 0 : index
      %77 = vector.load %arg5[%c5, %c0_23] : memref<10x128xf32, #tpu.memory_space<vmem>>, vector<1x128xf32>
      %78 = vector.shape_cast %77 : vector<1x128xf32> to vector<128xf32>
      %79 = vector.shape_cast %78 : vector<128xf32> to vector<1x128xf32>
      %80 = vector.shape_cast %76 : vector<8x1xi1> to vector<8x1xi1>
      %81 = vector.broadcast %80 : vector<8x1xi1> to vector<8x128xi1>
      %82 = vector.shape_cast %79 : vector<1x128xf32> to vector<1x128xf32>
      %83 = vector.broadcast %82 : vector<1x128xf32> to vector<8x128xf32>
      %84 = arith.select %81, %83, %74 : vector<8x128xi1>, vector<8x128xf32>
      %c6_i32 = arith.constant 6 : i32
      %85 = vector.broadcast %c6_i32 : i32 to vector<8x1xi32>
      %86 = arith.cmpi eq, %23, %85 : vector<8x1xi32>
      %c6 = arith.constant 6 : index
      %c0_24 = arith.constant 0 : index
      %87 = vector.load %arg5[%c6, %c0_24] : memref<10x128xf32, #tpu.memory_space<vmem>>, vector<1x128xf32>
      %88 = vector.shape_cast %87 : vector<1x128xf32> to vector<128xf32>
      %89 = vector.shape_cast %88 : vector<128xf32> to vector<1x128xf32>
      %90 = vector.shape_cast %86 : vector<8x1xi1> to vector<8x1xi1>
      %91 = vector.broadcast %90 : vector<8x1xi1> to vector<8x128xi1>
      %92 = vector.shape_cast %89 : vector<1x128xf32> to vector<1x128xf32>
      %93 = vector.broadcast %92 : vector<1x128xf32> to vector<8x128xf32>
      %94 = arith.select %91, %93, %84 : vector<8x128xi1>, vector<8x128xf32>
      %c7_i32 = arith.constant 7 : i32
      %95 = vector.broadcast %c7_i32 : i32 to vector<8x1xi32>
      %96 = arith.cmpi eq, %23, %95 : vector<8x1xi32>
      %c7 = arith.constant 7 : index
      %c0_25 = arith.constant 0 : index
      %97 = vector.load %arg5[%c7, %c0_25] : memref<10x128xf32, #tpu.memory_space<vmem>>, vector<1x128xf32>
      %98 = vector.shape_cast %97 : vector<1x128xf32> to vector<128xf32>
      %99 = vector.shape_cast %98 : vector<128xf32> to vector<1x128xf32>
      %100 = vector.shape_cast %96 : vector<8x1xi1> to vector<8x1xi1>
      %101 = vector.broadcast %100 : vector<8x1xi1> to vector<8x128xi1>
      %102 = vector.shape_cast %99 : vector<1x128xf32> to vector<1x128xf32>
      %103 = vector.broadcast %102 : vector<1x128xf32> to vector<8x128xf32>
      %104 = arith.select %101, %103, %94 : vector<8x128xi1>, vector<8x128xf32>
      %c8_i32_26 = arith.constant 8 : i32
      %105 = vector.broadcast %c8_i32_26 : i32 to vector<8x1xi32>
      %106 = arith.cmpi eq, %23, %105 : vector<8x1xi32>
      %c8 = arith.constant 8 : index
      %c0_27 = arith.constant 0 : index
      %107 = vector.load %arg5[%c8, %c0_27] : memref<10x128xf32, #tpu.memory_space<vmem>>, vector<1x128xf32>
      %108 = vector.shape_cast %107 : vector<1x128xf32> to vector<128xf32>
      %109 = vector.shape_cast %108 : vector<128xf32> to vector<1x128xf32>
      %110 = vector.shape_cast %106 : vector<8x1xi1> to vector<8x1xi1>
      %111 = vector.broadcast %110 : vector<8x1xi1> to vector<8x128xi1>
      %112 = vector.shape_cast %109 : vector<1x128xf32> to vector<1x128xf32>
      %113 = vector.broadcast %112 : vector<1x128xf32> to vector<8x128xf32>
      %114 = arith.select %111, %113, %104 : vector<8x128xi1>, vector<8x128xf32>
      %c9_i32 = arith.constant 9 : i32
      %115 = vector.broadcast %c9_i32 : i32 to vector<8x1xi32>
      %116 = arith.cmpi eq, %23, %115 : vector<8x1xi32>
      %c9 = arith.constant 9 : index
      %c0_28 = arith.constant 0 : index
      %117 = vector.load %arg5[%c9, %c0_28] : memref<10x128xf32, #tpu.memory_space<vmem>>, vector<1x128xf32>
      %118 = vector.shape_cast %117 : vector<1x128xf32> to vector<128xf32>
      %119 = vector.shape_cast %118 : vector<128xf32> to vector<1x128xf32>
      %120 = vector.shape_cast %116 : vector<8x1xi1> to vector<8x1xi1>
      %121 = vector.broadcast %120 : vector<8x1xi1> to vector<8x128xi1>
      %122 = vector.shape_cast %119 : vector<1x128xf32> to vector<1x128xf32>
      %123 = vector.broadcast %122 : vector<1x128xf32> to vector<8x128xf32>
      %124 = arith.select %121, %123, %114 : vector<8x128xi1>, vector<8x128xf32>
      %c0_29 = arith.constant 0 : index
      %c0_30 = arith.constant 0 : index
      %c0_31 = arith.constant 0 : index
      %125 = vector.load %arg6[%c0_29, %c0_30, %c0_31] : memref<1x8x128xf32, #tpu.memory_space<vmem>>, vector<1x8x128xf32>
      %126 = vector.shape_cast %125 : vector<1x8x128xf32> to vector<8x128xf32>
      %127 = vector.shape_cast %124 : vector<8x128xf32> to vector<1x8x128xf32>
      tpu.vector_store %arg6[%c0_29, %c0_30, %c0_31], %127 {strides = array<i32>} : memref<1x8x128xf32, #tpu.memory_space<vmem>>, vector<1x8x128xf32>,
    } else {
    }
    return
  }
  func.func @transform_1(%arg0: i32, %arg1: i32, %arg2: memref<2x8xi32, #tpu.memory_space<smem>>, %arg3: memref<1xi32, #tpu.memory_space<smem>>) -> (i32, i32) {
    %c0_i32 = arith.constant 0 : i32
    %c0_i32_0 = arith.constant 0 : i32
    %c0_i32_1 = arith.constant 0 : i32
    return %c0_i32, %c0_i32_0 : i32, i32
  }
  func.func @transform_2(%arg0: i32, %arg1: i32, %arg2: memref<2x8xi32, #tpu.memory_space<smem>>, %arg3: memref<1xi32, #tpu.memory_space<smem>>) -> (i32, i32, i32) {
    %c0_i32 = arith.constant 0 : i32
    %c0_i32_0 = arith.constant 0 : i32
    return %arg0, %arg1, %c0_i32 : i32, i32, i32
  }
}

</mosaic_0001>

<bundles_post_ra>
// kernel: tpu_custom_call.1
= control target key start
LH: loop header
LB: loop body
LE: loop exit
PB: predicated region body
PF: predicated region fallthrough
CT: control target
= control target key end

     0   :  { %s869_s20 = smov [#allocation5]   ;;  %s1093_s0 = inlined_call_operand.vmem [shape: s32[2,8], index: 0, kind: input, shape index: {}]   ;;  %s1094_s1 = inlined_call_operand.<no memory space> [shape: s32[1], index: 1, kind: input, shape index: {}]   ;;  %s1095_s2 = inlined_call_operand.hbm [shape: f32[128,128], index: 2, kind: input, shape index: {}]   ;;  %s1096_s3 = inlined_call_operand.hbm [shape: f32[10,128], index: 3, kind: input, shape index: {}]   ;;  %s1097_s4 = inlined_call_operand.hbm [shape: f32[2,8,128], index: 4, kind: output, shape index: {}]  }
   0x1   :  { %1101 = sst [smem:[#allocation24_spill]] %s1096_s3  ;;  %s10_s17 = sshll.u32 %s1093_s0, 4  ;;  %s11_s17 = int_to_ptr.vmem [resolvable:$true] %s10_s17 }
   0x2   :  { %14 = sst [smem:[#allocation6]] %s1094_s1 }
   0x3   :  { %13 = dma.vmem_to_smem %s11_s17, 32, %s869_s20, [#allocation4] }
   0x4   :  { %819 = dma.done.wait [#allocation4], 32 }
   0x5   :  { %820 = vsyncadd [#allocation4], 4294967264 }
   0x6   :  { %17 = sfence }
   0x7   :  { %18 = vsyncpa [#allocation8], 0 }
   0x8   :  { %19 = vsyncpa [#allocation9], 0 }
   0x9   :  { %21 = vsyncpa [#allocation9 + $0x1], 0  ;;  %s906_s21 = smov 0   ;;  %s908_s22 = smov 0  }
   0xa   :  { %s910_s23 = smov 0   ;;  %s912_s0 = smov 0  }
   0xb   :  { %s914_s24 = smov 0   ;;  %s916_s1 = smov 0  }
   0xc LB: > { %1102 = sst [smem:[#allocation22_spill]] %s851_s24  ;;  %s514_s25 = sadd.s32 4294967295, %s855_s1   ;;  %s855_s1 = sphi %s916_s1, %s27_s1   ;;  %s851_s24 = sphi %s914_s24, %s1109_s24   ;;  %s847_s0 = sphi %s912_s0, %s1108_s0   ;;  %s843_s23 = sphi %s910_s23, %s1112_s23   ;;  %s839_s22 = sphi %s908_s22, %s1111_s22   ;;  %s835_s21 = sphi %s906_s21, %s1110_s21  }
   0xd   : > { %s515_s26 = sadd.s32 4294967294, %s855_s1   ;;  %s39_s27 = sadd.s32 1, %s851_s24 }
   0xe   : > { %s69_s28 = sadd.s32 1, %s843_s23  ;;  %p41_p0 = scmp.ge.s32.totalorder %s39_s27, 2 }
   0xf   : > { %p79_p1 = scmp.ne.s32.totalorder %s843_s23, %s839_s22  ;;  %p80_p2 = scmp.eq.s32.totalorder %s514_s25, 1 }
  0x10   : > { %p85_p3 = scmp.ne.s32.totalorder %s839_s22, %s835_s21  ;;  %s1114_s27 = smov (%p41_p0, %s39_s27), 0 }
  0x11   : > { %1103 = sst [smem:[#allocation23_spill]] %s1114_s27  ;;  %p946_p4 = por %p80_p2, %p79_p1 }
  0x12   : > { %p86_p5 = scmp.eq.s32.totalorder %s515_s26, 1  ;;  %s64_s30 = ssub.s32 %s851_s24, %s1114_s27 }
  0x13   : > { %p516_p6 = scmp.ge.s32.totalorder %s855_s1, 1  ;;  %p67_p7 = scmp.eq.s32.totalorder %s64_s30, 0 }
  0x14   : > { %p953_p8 = por %p86_p5, %p85_p3  ;;  %p93_p9 = scmp.lt.s32.totalorder %s855_s1, 3 }
  0x15   : > { %s959_s6 = scalar_select %p67_p7, %s843_s23, %s69_s28  }
  0x16   : > { %p94_p10 = pnand %p516_p6, %p93_p9  ;;  %p576_p11 = scmp.eq.s32.totalorder %s514_s25, 0 }
  0x17   : > { %s1106_s3 = sld [smem:[#allocation24_spill]]  ;;  %s870_s10 = smov [#allocation7]  }
  0x18   : > { %p568_p12 = pneg %p94_p10  ;;  %s106_s11 = sshll.u32 %s870_s10, 4  ;;  %s107_s11 = int_to_ptr.vmem [resolvable:$true] %s106_s11 }
  0x19   : > { %s871_s12 = smov 128   ;;  %s872_s13 = smov 8  }
  0x1a   : > { %p569_p13 = pnand %p576_p11, %p568_p12  ;;  %122 = sbr.rel (%p94_p10) target bundleno = 222 (0xde), region = 24 }
  0x1d   : > { %s104_s9 = sshll.u32 %s1106_s3, 4  ;;  %s105_s9 = int_to_ptr.hbm [resolvable:$true] %s104_s9 }
  0x1e   : > { %571 = dma.hbm_to_vmem [thread:$0]  (!%p569_p13), %s105_s9, 256, %s107_s11, [#allocation8], %s871_s12, %s871_s12, %s872_s13  }
  0x1f   : > { %822 = dma.done.wait (%p576_p11), [#allocation8], 256  }
  0x20   : > { %824 = vsyncadd (%p576_p11), [#allocation8], 4294967040  ;;  %s1098_s14 = sand.u32 1, %s839_s22   ;;  %s965_s15 = sld [smem:[#allocation6]] }
  0x21   : > { %s520_s16 = sshll.u32 %s1098_s14, 3 }
  0x22   : > { %s980_s19 = scalar_lea.vmem [#allocation10], %s520_s16 }
  0x26   : > { %p141_p0 = scmp.gt.s32.totalorder %s965_s15, 0  ;;  %p521_p1 = scmp.lt.s32.totalorder %s965_s15, 8 }
  0x28   : > { %s142_s17 = scalar_select %p141_p0, %s965_s15, 0 }
  0x2a   : > { %s1116_s17 = smov (!%p521_p1, %s142_s17), 8 }
  0x2b   : > { %p145_p2 = scmp.lt.s32.totalorder %s1116_s17, 8  ;;  %p559_p3 = scmp.le.s32.totalorder %s1116_s17, 0 }
  0x2c   : > { %s983_s20 = smov (!%p559_p3), 0  }
  0x2d   : > { %s978_s18 = scalar_select %p145_p2, %s1116_s17, 8 }
  0x2e   : > { %469 = sbr.rel (%p559_p3) target bundleno = 91 (0x5b), region = 107 }
  0x33 LB: >> { %s154_s25 = sshra.s32 %s859_s20, 7  ;;  %s159_s26 = sand.u32 127, %s859_s20  ;;  %s859_s20 = sphi %s983_s20, %s150_s20  }
  0x34   : >> { %s156_s28 = sadd.s32 %s847_s0, %s154_s25  ;;  %p162_p5 = scmp.lt.s32.totalorder %s859_s20, 0 }
  0x35   : >> { %s527_s30 = sshll.u32 %s156_s28, 7  ;;  %s163_s7 = ssub.s32 0, %s859_s20 }
  0x36   : >> { %s160_s8 = sadd.s32 %s527_s30, %s159_s26  ;;  %s528_s9 = smin.u32 %s859_s20, %s163_s7 }
  0x37   : >> { %s161_s10 = sld [smem:[#allocation5 + %s160_s8]]  ;;  %s165_s11 = sand.u32 7, %s528_s9  }
  0x38   : >> { %s166_s12 = ssub.s32 0, %s165_s11  ;;  %s175_s13 = scalar_lea.vmem [#allocation2], %s859_s20 }
  0x39   : >> { %s1118_s12 = smov (!%p162_p5, %s166_s12), %s165_s11  ;;  %s995_s16 = sshll.u32 %s175_s13, 4  ;;  %s187_s16 = int_to_ptr.vmem [resolvable:$true] %s995_s16 }
  0x3a   : >> { %p530_p6 = scmp.lt.s32.totalorder %s1118_s12, 0  ;;  %s172_s14 = sadd.s32 8, %s1118_s12 }
  0x3b   : >> { %s711_s11 = scalar_lea.hbm %s1095_s2, 128 }
  0x3c   : >> { %s1120_s14 = smov (!%p530_p6, %s172_s14), %s1118_s12 }
  0x3d   : >> { %s174_s25 = scalar_lea.hbm %s1095_s2, %s161_s10  ;;  %s176_s28 = scalar_lea.sflag [#allocation3], %s1120_s14 }
  0x3e   : >> { %s184_s26 = sshll.u32 %s174_s25, 4  ;;  %s185_s26 = int_to_ptr.hbm [resolvable:$true] %s184_s26 }
  0x3f   : >> { %s707_s30 = sshra.s32 %s185_s26, 4  ;;  %s708_s30 = int_to_ptr.hbm [resolvable:$true] %s707_s30 }
  0x40   : >> { %s709_s7 = scalar_lea.hbm %s708_s30, 1  ;;  %p712_p9 = scmp.lt.s32.totalorder %s708_s30, %s1095_s2 }
  0x41   : >> { %p710_p7 = scmp.ne.s32.totalorder %s708_s30, %s709_s7  ;;  %p713_p10 = scmp.lt.s32.totalorder %s711_s11, %s709_s7 }
  0x43   : >> { %p714_p11 = por %p713_p10, %p712_p9 }
  0x45   : >> { %p715_p12 = pnand %p714_p11, %p710_p7 }
  0x47   : >> { %718 = shalt.err (!%p715_p12)  }
  0x48   : >> { %s719_s3 = sshra.s32 %s187_s16, 4  ;;  %s873_s14 = smov [#allocation2]   ;;  %s720_s3 = int_to_ptr.vmem [resolvable:$true] %s719_s3 }
  0x49   : >> { %s721_s27 = scalar_lea.vmem %s720_s3, 1  ;;  %s723_s10 = scalar_lea.vmem %s873_s14, 8 }
  0x4a   : >> { %p722_p13 = scmp.ne.s32.totalorder %s720_s3, %s721_s27  ;;  %p724_p0 = scmp.lt.s32.totalorder %s720_s3, [#allocation2] }
  0x4b   : >> { %p725_p1 = scmp.lt.s32.totalorder %s723_s10, %s721_s27 }
  0x4d   : >> { %p726_p3 = por %p725_p1, %p724_p0 }
  0x4f   : >> { %p727_p5 = pnand %p726_p3, %p722_p13 }
  0x51   : >> { %730 = shalt.err (!%p727_p5)  }
  0x52   : >> { %189 = dma.hbm_to_vmem [thread:$0]  %s185_s26, 16, %s187_s16, %s176_s28 }
  0x53   : >> { %s150_s20 = sadd.s32 1, %s859_s20  }
  0x54   : >> { %p149_p6 = scmp.ge.s32.totalorder %s150_s20, %s978_s18 }
  0x56   : > { %152 = sbr.rel (!%p149_p6) target bundleno = 51 (0x33), region = 113 }
  0x5b PF: > { %p531_p7 = scmp.le.s32.totalorder %s1116_s17, 8 }
  0x5c   : > { %s1015_s25 = smov (!%p531_p7), 8  }
  0x5d   : > { %474 = sbr.rel (%p531_p7) target bundleno = 149 (0x95), region = 118 }
  0x62 LB: >> { %s532_s16 = sadd.s32 4294967288, %s863_s25  ;;  %s863_s25 = sphi %s1015_s25, %s193_s25  }
  0x63   : >> { %p197_p9 = scmp.lt.s32.totalorder %s532_s16, 0  ;;  %s198_s26 = ssub.s32 0, %s532_s16 }
  0x64   : >> { %s533_s28 = smin.u32 %s532_s16, %s198_s26 }
  0x65   : >> { %s200_s30 = sand.u32 7, %s533_s28  }
  0x66   : >> { %s201_s7 = ssub.s32 0, %s200_s30 }
  0x67   : >> { %s1122_s7 = smov (!%p197_p9, %s201_s7), %s200_s30 }
  0x68   : >> { %p535_p10 = scmp.lt.s32.totalorder %s1122_s7, 0  ;;  %s207_s20 = sadd.s32 8, %s1122_s7 }
  0x6a   : >> { %s1124_s20 = smov (!%p535_p10, %s207_s20), %s1122_s7 }
  0x6b   : >> { %s209_s8 = scalar_lea.sflag [#allocation3], %s1124_s20 }
  0x6c   : >> { %825 = dma.done.wait %s209_s8, 16 }
  0x6d   : >> { %826 = vsyncadd %s209_s8, 4294967280  ;;  %s214_s9 = sshra.s32 %s863_s25, 7  ;;  %s219_s11 = sand.u32 127, %s863_s25 }
  0x6e   : >> { %s216_s13 = sadd.s32 %s847_s0, %s214_s9  ;;  %p222_p11 = scmp.lt.s32.totalorder %s863_s25, 0 }
  0x6f   : >> { %s536_s12 = sshll.u32 %s216_s13, 7  ;;  %s223_s3 = ssub.s32 0, %s863_s25 }
  0x70   : >> { %s220_s27 = sadd.s32 %s536_s12, %s219_s11  ;;  %s537_s14 = smin.u32 %s863_s25, %s223_s3 }
  0x71   : >> { %s221_s10 = sld [smem:[#allocation5 + %s220_s27]]  ;;  %s225_s16 = sand.u32 7, %s537_s14  }
  0x72   : >> { %s226_s26 = ssub.s32 0, %s225_s16  ;;  %s235_s28 = scalar_lea.vmem [#allocation2], %s863_s25 }
  0x73   : >> { %s1126_s26 = smov (!%p222_p11, %s226_s26), %s225_s16  ;;  %s1028_s30 = sshll.u32 %s235_s28, 4  ;;  %s247_s30 = int_to_ptr.vmem [resolvable:$true] %s1028_s30 }
  0x74   : >> { %p539_p12 = scmp.lt.s32.totalorder %s1126_s26, 0  ;;  %s232_s24 = sadd.s32 8, %s1126_s26 }
  0x75   : >> { %s735_s14 = scalar_lea.hbm %s1095_s2, 128 }
  0x76   : >> { %s1128_s24 = smov (!%p539_p12, %s232_s24), %s1126_s26 }
  0x77   : >> { %s234_s8 = scalar_lea.hbm %s1095_s2, %s221_s10  ;;  %s236_s11 = scalar_lea.sflag [#allocation3], %s1128_s24 }
  0x78   : >> { %s244_s9 = sshll.u32 %s234_s8, 4  ;;  %s245_s9 = int_to_ptr.hbm [resolvable:$true] %s244_s9 }
  0x79   : >> { %s731_s13 = sshra.s32 %s245_s9, 4  ;;  %s732_s13 = int_to_ptr.hbm [resolvable:$true] %s731_s13 }
  0x7a   : >> { %s733_s12 = scalar_lea.hbm %s732_s13, 1  ;;  %p736_p0 = scmp.lt.s32.totalorder %s732_s13, %s1095_s2 }
  0x7b   : >> { %p734_p13 = scmp.ne.s32.totalorder %s732_s13, %s733_s12  ;;  %p737_p1 = scmp.lt.s32.totalorder %s735_s14, %s733_s12 }
  0x7d   : >> { %p738_p3 = por %p737_p1, %p736_p0 }
  0x7f   : >> { %p739_p5 = pnand %p738_p3, %p734_p13 }
  0x81   : >> { %742 = shalt.err (!%p739_p5)  }
  0x82   : >> { %s743_s10 = sshra.s32 %s247_s30, 4  ;;  %s874_s24 = smov [#allocation2]   ;;  %s744_s10 = int_to_ptr.vmem [resolvable:$true] %s743_s10 }
  0x83   : >> { %s745_s26 = scalar_lea.vmem %s744_s10, 1  ;;  %s747_s7 = scalar_lea.vmem %s874_s24, 8 }
  0x84   : >> { %p746_p6 = scmp.ne.s32.totalorder %s744_s10, %s745_s26  ;;  %p748_p7 = scmp.lt.s32.totalorder %s744_s10, [#allocation2] }
  0x85   : >> { %p749_p9 = scmp.lt.s32.totalorder %s747_s7, %s745_s26 }
  0x87   : >> { %p750_p10 = por %p749_p9, %p748_p7 }
  0x89   : >> { %p751_p11 = pnand %p750_p10, %p746_p6 }
  0x8b   : >> { %754 = shalt.err (!%p751_p11)  }
  0x8c   : >> { %249 = dma.hbm_to_vmem [thread:$0]  %s245_s9, 16, %s247_s30, %s236_s11 }
  0x8d   : >> { %s193_s25 = sadd.s32 1, %s863_s25  }
  0x8e   : >> { %p192_p12 = scmp.ge.s32.totalorder %s193_s25, %s1116_s17 }
  0x90   : > { %195 = sbr.rel (!%p192_p12) target bundleno = 98 (0x62), region = 124 }
  0x95 PF: > { %s250_s20 = ssub.s32 %s1116_s17, %s978_s18  }
  0x96   : > { %p478_p13 = scmp.ge.s32.totalorder %s250_s20, %s1116_s17 }
  0x97   : > { %s865_s8 = smov (!%p478_p13), %s250_s20  }
  0x98   : > { %479 = sbr.rel (%p478_p13) target bundleno = 175 (0xaf), region = 129 }
  0x9d LB: >> { %p257_p0 = scmp.lt.s32.totalorder %s867_s8, 0  ;;  %s258_s30 = ssub.s32 0, %s867_s8  ;;  %s867_s8 = sphi %s865_s8, %s254_s8  }
  0x9e   : >> { %s540_s9 = smin.u32 %s867_s8, %s258_s30 }
  0x9f   : >> { %s260_s11 = sand.u32 7, %s540_s9  }
  0xa0   : >> { %s261_s13 = ssub.s32 0, %s260_s11 }
  0xa1   : >> { %s1130_s13 = smov (!%p257_p0, %s261_s13), %s260_s11 }
  0xa2   : >> { %p542_p1 = scmp.lt.s32.totalorder %s1130_s13, 0  ;;  %s267_s25 = sadd.s32 8, %s1130_s13 }
  0xa4   : >> { %s1132_s25 = smov (!%p542_p1, %s267_s25), %s1130_s13 }
  0xa5   : >> { %s269_s12 = scalar_lea.sflag [#allocation3], %s1132_s25 }
  0xa6   : >> { %827 = dma.done.wait %s269_s12, 16 }
  0xa7   : >> { %828 = vsyncadd %s269_s12, 4294967280  ;;  %s254_s8 = sadd.s32 1, %s867_s8  }
  0xa8   : >> { %p253_p3 = scmp.ge.s32.totalorder %s254_s8, %s1116_s17 }
  0xaa   : > { %256 = sbr.rel (!%p253_p3) target bundleno = 157 (0x9d), region = 135 }
  0xaf PF: > { %276 = sbr.rel (%p145_p2) target bundleno = 182 (0xb6), region = 61 }
  0xb4   : > { %v277_v0 = vld [vmem:[#allocation2] sm:$0xff] }
  0xb5   : > { %278 = vst [vmem:[%s980_s19] sm:$0xff] %v277_v0 }
  0xb6 PF: > { %p544_p5 = scmp.ge.s32.totalorder %s1116_s17, 8 }
  0xb8   : > { %282 = sbr.rel (%p544_p5) target bundleno = 207 (0xcf), region = 65 }
  0xbd   : > { %v283_v1 = vlaneseq  ;;  %v287_v2 = vstv %s965_s15  ;;  %v289_v4 = vld [vmem:[#allocation2] sm:$0xff]  ;;  %v655_v5 = vld [vmem:[#allocation7] ss:$0 sm:$0xff]  ;;  %v656_v7 = vld [vmem:[#allocation7 + $0x1] ss:$0 sm:$0xff] }
  0xbe   : > { %v657_v8 = vld [vmem:[#allocation7 + $0x2] ss:$0 sm:$0xff]  ;;  %v658_v9 = vld [vmem:[#allocation7 + $0x3] ss:$0 sm:$0xff]  ;;  %v659_v11 = vld [vmem:[#allocation7 + $0x4] ss:$0 sm:$0xff] }
  0xbf   : > { %v284_v3 = vshrl.u32 %v283_v1, 7  ;;  %v660_v13 = vld [vmem:[#allocation7 + $0x5] ss:$0 sm:$0xff]  ;;  %v661_v15 = vld [vmem:[#allocation7 + $0x6] ss:$0 sm:$0xff] }
  0xc0   : > { %v662_v17 = vld [vmem:[#allocation7 + $0x7] ss:$0 sm:$0xff]  ;;  %v663_v19 = vld [vmem:[#allocation7 + $0x8] ss:$0 sm:$0xff]  ;;  %v664_v21 = vld [vmem:[#allocation7 + $0x9] ss:$0 sm:$0xff] }
  0xc1   : > { %v288_v6 = vsub.s32 %v284_v3, %v287_v2 }
  0xc3   : > { %vm290_vm0 = vcmp.eq.s32.totalorder %v288_v6, 0  ;;  %vm296_vm1 = vcmp.eq.s32.totalorder %v288_v6, 1  ;;  %vm302_vm2 = vcmp.eq.s32.totalorder %v288_v6, 2  ;;  %vm308_vm3 = vcmp.eq.s32.totalorder %v288_v6, 3 }
  0xc4   : > { %v295_v10 = vsel %vm290_vm0, %v655_v5, %v289_v4  ;;  %vm314_vm4 = vcmp.eq.s32.totalorder %v288_v6, 4  ;;  %vm320_vm5 = vcmp.eq.s32.totalorder %v288_v6, 5  ;;  %vm326_vm6 = vcmp.eq.s32.totalorder %v288_v6, 6 }
  0xc5   : > { %v301_v12 = vsel %vm296_vm1, %v656_v7, %v295_v10  ;;  %vm332_vm7 = vcmp.eq.s32.totalorder %v288_v6, 7  ;;  %vm338_vm8 = vcmp.eq.s32.totalorder %v288_v6, 8  ;;  %vm344_vm9 = vcmp.eq.s32.totalorder %v288_v6, 9 }
  0xc6   : > { %v307_v14 = vsel %vm302_vm2, %v657_v8, %v301_v12 }
  0xc7   : > { %v313_v16 = vsel %vm308_vm3, %v658_v9, %v307_v14 }
  0xc8   : > { %v319_v18 = vsel %vm314_vm4, %v659_v11, %v313_v16 }
  0xc9   : > { %v325_v20 = vsel %vm320_vm5, %v660_v13, %v319_v18 }
  0xca   : > { %v331_v22 = vsel %vm326_vm6, %v661_v15, %v325_v20 }
  0xcb   : > { %v337_v23 = vsel %vm332_vm7, %v662_v17, %v331_v22 }
  0xcc   : > { %v343_v24 = vsel %vm338_vm8, %v663_v19, %v337_v23 }
  0xcd   : > { %v349_v25 = vsel %vm344_vm9, %v664_v21, %v343_v24 }
  0xce   : > { %350 = vst [vmem:[%s980_s19] sm:$0xff] %v349_v25 }
  0xcf PF: > { %s546_s15 = sshll.u32 %s847_s0, 3  ;;  %s365_s27 = sshll.u32 %s980_s19, 4  ;;  %s366_s27 = int_to_ptr.vmem [resolvable:$true] %s365_s27 }
  0xd0   : > { %s363_s3 = scalar_lea.hbm %s1097_s4, %s546_s15  ;;  %s1107_s16 = sand.u32 1, %s839_s22  }
  0xd1   : > { %s367_s14 = sshll.u32 %s363_s3, 4  ;;  %s352_s28 = scalar_lea.sflag [#allocation9], %s1107_s16  ;;  %s368_s14 = int_to_ptr.hbm [resolvable:$true] %s367_s14 }
  0xd2   : > { %s769_s10 = sshra.s32 %s368_s14, 4  ;;  %s775_s0 = scalar_lea.hbm %s1097_s4, 16  ;;  %s770_s10 = int_to_ptr.hbm [resolvable:$true] %s769_s10 }
  0xd3   : > { %s771_s26 = scalar_lea.hbm %s770_s10, 8  ;;  %p776_p9 = scmp.lt.s32.totalorder %s770_s10, %s1097_s4 }
  0xd4   : > { %p772_p2 = scmp.ne.s32.totalorder %s770_s10, %s771_s26  ;;  %p777_p10 = scmp.lt.s32.totalorder %s775_s0, %s771_s26 }
  0xd6   : > { %p773_p6 = pnand %p772_p2, %p946_p4  ;;  %p778_p11 = por %p777_p10, %p776_p9 }
  0xd8   : > { %p774_p7 = pneg %p773_p6 }
  0xda   : > { %p779_p12 = pnand %p778_p11, %p774_p7 }
  0xdc   : > { %782 = shalt.err (!%p779_p12)
}
  0xdd   : > { %566 = dma.vmem_to_hbm [thread:$0]  (%p946_p4), %s366_s27, 128, %s368_s14, %s352_s28  }
  0xde PF: > { %p578_p13 = scmp.ge.s32.totalorder %s855_s1, 2  ;;  %s379_s19 = sand.u32 1, %s835_s21  }
  0xdf   : > { %s380_s30 = scalar_lea.sflag [#allocation9], %s379_s19 }
  0xe0   : > { %p573_p0 = pnand %p578_p13, %p953_p8 }
  0xe2   : > { %p574_p1 = pneg %p573_p0 }
  0xe4   : > { %830 = dma.done.wait (%p574_p1), %s380_s30, 128  }
  0xe5   : > { %832 = vsyncadd (%p574_p1), %s380_s30, 4294967168  ;;  %s27_s1 = sadd.s32 1, %s855_s1   ;;  %s1108_s0 = sld [smem:[#allocation22_spill]] }
  0xe6   : > { %p24_p3 = scmp.ge.s32.totalorder %s27_s1, 4   ;;  %s1109_s24 = sld [smem:[#allocation23_spill]] }
  0xe7   : > { %s1110_s21 = smov %s839_s22  ;;  %s1111_s22 = smov %s843_s23 }
  0xe8   : > { %s1112_s23 = smov %s959_s6  ;;  %26 = sbr.rel (!%p24_p3) target bundleno = 12 (0xc), region = 146 }
  0xed   :  { %386 = vsyncpa [#allocation8], 1 }
  0xee   :  { %388 = vsyncpa [#allocation8 + $0x1], 1 }
  0xef   :  { %389 = vsyncpa [#allocation9], 1 }
  0xf0   :  { %391 = vsyncpa [#allocation9 + $0x1], 1 }
  0xf1   :  { %392 = vsyncmov [#allocation3] }
  0xf4   :  { %s393_s29 = vpop.sfrf %392 }
  0xf5   :  { %p549_p4 = scmp.ne.s32.totalorder %s393_s29, 0 }
  0xf7   :  { %397 = shalt.err (%p549_p4)  }
  0xf8   :  { %399 = vsyncmov [#allocation3 + $0x1] }
  0xfb   :  { %s400_s5 = vpop.sfrf %399 }
  0xfc   :  { %p550_p8 = scmp.ne.s32.totalorder %s400_s5, 0 }
  0xfe   :  { %404 = shalt.err (%p550_p8)  }
  0xff   :  { %406 = vsyncmov [#allocation3 + $0x2] }
 0x102   :  { %s407_s6 = vpop.sfrf %406 }
 0x103   :  { %p551_p5 = scmp.ne.s32.totalorder %s407_s6, 0 }
 0x105   :  { %411 = shalt.err (%p551_p5)  }
 0x106   :  { %413 = vsyncmov [#allocation3 + $0x3] }
 0x109   :  { %s414_s9 = vpop.sfrf %413 }
 0x10a   :  { %p552_p2 = scmp.ne.s32.totalorder %s414_s9, 0 }
 0x10c   :  { %418 = shalt.err (%p552_p2)  }
 0x10d   :  { %420 = vsyncmov [#allocation3 + $0x4] }
 0x110   :  { %s421_s2 = vpop.sfrf %420 }
 0x111   :  { %p553_p6 = scmp.ne.s32.totalorder %s421_s2, 0 }
 0x113   :  { %425 = shalt.err (%p553_p6)  }
 0x114   :  { %427 = vsyncmov [#allocation3 + $0x5] }
 0x117   :  { %s428_s4 = vpop.sfrf %427 }
 0x118   :  { %p554_p7 = scmp.ne.s32.totalorder %s428_s4, 0 }
 0x11a   :  { %432 = shalt.err (%p554_p7)  }
 0x11b   :  { %434 = vsyncmov [#allocation3 + $0x6] }
 0x11e   :  { %s435_s21 = vpop.sfrf %434 }
 0x11f   :  { %p555_p9 = scmp.ne.s32.totalorder %s435_s21, 0 }
 0x121   :  { %439 = shalt.err (%p555_p9)  }
 0x122   :  { %441 = vsyncmov [#allocation3 + $0x7] }
 0x125   :  { %s442_s22 = vpop.sfrf %441 }
 0x126   :  { %p556_p10 = scmp.ne.s32.totalorder %s442_s22, 0 }
 0x128   :  { %446 = shalt.err (%p556_p10)  }

</bundles_post_ra>
